<compile_context>
chip_gen: v7x
topology: tpu7x:2x2x1
jax: 0.10.0
libtpu: 0.0.40
codegen_flags: <defaults>
</compile_context>

<pallas_src>
import jax
import jax.numpy as jnp
from jax.experimental import pallas as pl
from jax.experimental.pallas import tpu as pltpu


def sap_kernel(x_ref, w_ref, b_ref, a_ref, o_ref):
    # x_ref: (TB, T, D)  block of batch rows
    # w_ref: (D, D)      nn.Linear weight, torch layout (out, in)
    # b_ref: (1, D)      linear bias
    # a_ref: (1, D)      attention vector (n_heads = 1), as a row
    # o_ref: (TB, D)     pooled output block (lane/sublane dense)
    tb, t, d = x_ref.shape
    x = x_ref[...]                                            # native dtype

    # ---- linear + relu: one tall MXU matmul, f32 accumulation ----
    x2 = x.reshape(tb * t, d)
    h = jax.lax.dot_general(
        x2, w_ref[...],
        dimension_numbers=(((1,), (1,)), ((), ())),           # x @ W^T
        preferred_element_type=jnp.float32)                   # (TB*T, D) f32
    h = jnp.maximum(h + b_ref[...].astype(jnp.float32), 0.0)
    h = h.reshape(tb, t, d)

    # ---- attention scores: VPU mul + lane reduce (no N=1 matmul) ----
    a = a_ref[...].astype(jnp.float32).reshape(1, 1, d)
    s = jnp.sum(h * a, axis=-1, keepdims=True)                # (TB, T, 1) f32

    # ---- softmax over frames (dim=1 of the (B, T, 1) view) ----
    s = s - jnp.max(s, axis=1, keepdims=True)
    e = jnp.exp(s)
    denom = jnp.sum(e, axis=1, keepdims=True)                 # (TB, 1, 1)
    w = e * pl.reciprocal(denom, approx=True)                 # EUP vrcp slot

    # ---- weighted sum over frames (promotes to f32 via w) ----
    pooled = jnp.sum(x * w, axis=1)                           # (TB, D) f32
    o_ref[...] = pooled.astype(o_ref.dtype)


def _pick_block_b(B, T, D, itemsize, budget_bytes=4 << 20):
    """Largest divisor of B whose x block fits ~budget_bytes (double-buffered
    by the pipeline), keeping the output block sublane-aligned (multiple of 8)
    unless the block covers the whole batch."""
    best = 1
    for cand in range(1, B + 1):
        if B % cand:
            continue
        if cand != B and cand % 8:
            continue
        if cand * T * D * itemsize > budget_bytes:
            continue
        best = max(best, cand)
    return best


def sap_forward(x, weight, bias, attention, *, block_b=None):
    """x: (B, T, D). weight: (D, D) torch nn.Linear layout (out, in).
    bias: (D,). attention: (D, 1). Returns (B, D)."""
    B, T, D = x.shape
    if block_b is None:
        block_b = _pick_block_b(B, T, D, jnp.dtype(x.dtype).itemsize)
    assert B % block_b == 0, (B, block_b)

    bias_row = bias.reshape(1, D)
    attn_row = attention.reshape(1, D)     # (D, 1) -> (1, D), same element order

    return pl.pallas_call(
        sap_kernel,
        out_shape=jax.ShapeDtypeStruct((B, D), x.dtype),
        grid_spec=pltpu.PrefetchScalarGridSpec(
            num_scalar_prefetch=0,
            grid=(B // block_b,),
            in_specs=[
                pl.BlockSpec((block_b, T, D), lambda b: (b, 0, 0)),   # x
                pl.BlockSpec((D, D), lambda b: (0, 0)),               # weight
                pl.BlockSpec((1, D), lambda b: (0, 0)),               # bias
                pl.BlockSpec((1, D), lambda b: (0, 0)),               # attention
            ],
            out_specs=pl.BlockSpec((block_b, D), lambda b: (b, 0)),
        ),
        compiler_params=pltpu.CompilerParams(
            dimension_semantics=("parallel",)),
    )(x, weight, bias_row, attn_row)


def sap_reference(x, weight, bias, attention):
    h = jax.nn.relu(jnp.einsum("btd,ed->bte", x, weight) + bias)
    s = jnp.einsum("bte,eh->bth", h, attention)    # (B, T, 1)
    w = jax.nn.softmax(s, axis=1)
    return jnp.sum(x * w, axis=1)


if __name__ == "__main__":
    key = jax.random.PRNGKey(0)
    B, T, D = 2, 8, 32
    k1, k2, k3, k4 = jax.random.split(key, 4)

    x = jax.random.normal(k1, (B, T, D), dtype=jnp.float32)
    # Deterministic synthetic parameters (SAP.__init__ with dim=D, n_heads=1)
    weight = jax.random.normal(k2, (D, D), dtype=jnp.float32) * 0.1     # nn.Linear.weight
    bias = jax.random.normal(k3, (D,), dtype=jnp.float32) * 0.1         # nn.Linear.bias
    attention = jax.random.normal(k4, (D, 1), dtype=jnp.float32) * 0.1  # attention param

    out = sap_forward(x, weight, bias, attention)
    jax.block_until_ready(out)

    ref = sap_reference(x, weight, bias, attention)
    assert out.shape == (B, D), out.shape
    # approx reciprocal in the softmax denominator -> slightly looser tolerance
    assert jnp.allclose(out, ref, atol=2e-3, rtol=2e-3), float(
        jnp.max(jnp.abs(out - ref)))
    print("KERNEL_OK")
</pallas_src>

<mosaic_0001>
module attributes {stable_mosaic.version = 11 : i64} {
  func.func @sap_kernel(%arg0: i32, %arg1: memref<2x8x32xf32, #tpu.memory_space<vmem>>, %arg2: memref<32x32xf32, #tpu.memory_space<vmem>>, %arg3: memref<1x32xf32, #tpu.memory_space<vmem>>, %arg4: memref<1x32xf32, #tpu.memory_space<vmem>>, %arg5: memref<2x32xf32, #tpu.memory_space<vmem>>) attributes {dimension_semantics = [#tpu.dimension_semantics<parallel>], iteration_bounds = array<i64: 1>, scalar_prefetch = 0 : i64, scratch_operands = 0 : i64, tpu.core_type = #tpu.core_type<tc>, window_params = [{transform_indices = @transform_0, window_bounds = array<i64: 2, 8, 32>}, {pipeline_mode = #tpu.pipeline_mode<synchronous>, transform_indices = @transform_1, window_bounds = array<i64: 32, 32>}, {pipeline_mode = #tpu.pipeline_mode<synchronous>, transform_indices = @transform_2, window_bounds = array<i64: 1, 32>}, {pipeline_mode = #tpu.pipeline_mode<synchronous>, transform_indices = @transform_3, window_bounds = array<i64: 1, 32>}, {transform_indices = @transform_4, window_bounds = array<i64: 2, 32>}]} {
    %c0 = arith.constant 0 : index
    %c0_0 = arith.constant 0 : index
    %c0_1 = arith.constant 0 : index
    %0 = vector.load %arg1[%c0, %c0_0, %c0_1] : memref<2x8x32xf32, #tpu.memory_space<vmem>>, vector<2x8x32xf32>
    %1 = vector.shape_cast %0 : vector<2x8x32xf32> to vector<16x32xf32>
    %c0_2 = arith.constant 0 : index
    %c0_3 = arith.constant 0 : index
    %2 = vector.load %arg2[%c0_2, %c0_3] : memref<32x32xf32, #tpu.memory_space<vmem>>, vector<32x32xf32>
    %cst = arith.constant dense<0.000000e+00> : vector<16x32xf32>
    %3 = tpu.matmul %1, %2, %cst {dimension_numbers = #tpu.dot_dimension_numbers<[1], [1], [0], [0], [0, 0, 1, 0], [], []>} : vector<16x32xf32>, vector<32x32xf32>, vector<16x32xf32> -> vector<16x32xf32>
    %c0_4 = arith.constant 0 : index
    %c0_5 = arith.constant 0 : index
    %4 = vector.load %arg3[%c0_4, %c0_5] : memref<1x32xf32, #tpu.memory_space<vmem>>, vector<1x32xf32>
    %5 = vector.broadcast %4 : vector<1x32xf32> to vector<16x32xf32>
    %6 = arith.addf %3, %5 : vector<16x32xf32>
    %cst_6 = arith.constant 0.000000e+00 : f32
    %7 = vector.broadcast %cst_6 : f32 to vector<16x32xf32>
    %8 = arith.maximumf %6, %7 : vector<16x32xf32>
    %9 = vector.shape_cast %8 : vector<16x32xf32> to vector<2x8x32xf32>
    %c0_7 = arith.constant 0 : index
    %c0_8 = arith.constant 0 : index
    %10 = vector.load %arg4[%c0_7, %c0_8] : memref<1x32xf32, #tpu.memory_space<vmem>>, vector<1x32xf32>
    %11 = vector.shape_cast %10 : vector<1x32xf32> to vector<1x1x32xf32>
    %12 = vector.broadcast %11 : vector<1x1x32xf32> to vector<2x8x32xf32>
    %13 = arith.mulf %9, %12 : vector<2x8x32xf32>
    %cst_9 = arith.constant dense<0.000000e+00> : vector<2x8xf32>
    %14 = vector.multi_reduction <add>, %13, %cst_9 [2] : vector<2x8x32xf32> to vector<2x8xf32>
    %15 = vector.shape_cast %14 : vector<2x8xf32> to vector<2x8x1xf32>
    %cst_10 = arith.constant dense<0xFF800000> : vector<2x1xf32>
    %16 = vector.multi_reduction <maximumf>, %15, %cst_10 [1] : vector<2x8x1xf32> to vector<2x1xf32>
    %17 = vector.shape_cast %16 : vector<2x1xf32> to vector<2x1x1xf32>
    %18 = vector.broadcast %17 : vector<2x1x1xf32> to vector<2x8x1xf32>
    %19 = arith.subf %15, %18 : vector<2x8x1xf32>
    %20 = math.exp %19 : vector<2x8x1xf32>
    %cst_11 = arith.constant dense<0.000000e+00> : vector<2x1xf32>
    %21 = vector.multi_reduction <add>, %20, %cst_11 [1] : vector<2x8x1xf32> to vector<2x1xf32>
    %22 = vector.shape_cast %21 : vector<2x1xf32> to vector<2x1x1xf32>
    %23 = tpu.reciprocal %22 {approx = true} : vector<2x1x1xf32> -> vector<2x1x1xf32>
    %24 = vector.broadcast %23 : vector<2x1x1xf32> to vector<2x8x1xf32>
    %25 = arith.mulf %20, %24 : vector<2x8x1xf32>
    %26 = vector.broadcast %25 : vector<2x8x1xf32> to vector<2x8x32xf32>
    %27 = arith.mulf %0, %26 : vector<2x8x32xf32>
    %cst_12 = arith.constant dense<0.000000e+00> : vector<2x32xf32>
    %28 = vector.multi_reduction <add>, %27, %cst_12 [1] : vector<2x8x32xf32> to vector<2x32xf32>
    %c0_13 = arith.constant 0 : index
    %c0_14 = arith.constant 0 : index
    %29 = vector.load %arg5[%c0_13, %c0_14] : memref<2x32xf32, #tpu.memory_space<vmem>>, vector<2x32xf32>
    tpu.vector_store %arg5[%c0_13, %c0_14], %28 {strides = array<i32>} : memref<2x32xf32, #tpu.memory_space<vmem>>, vector<2x32xf32>,
    return
  }
  func.func @transform_0(%arg0: i32) -> (i32, i32, i32) {
    %c0_i32 = arith.constant 0 : i32
    %c0_i32_0 = arith.constant 0 : i32
    %c0_i32_1 = arith.constant 0 : i32
    return %arg0, %c0_i32, %c0_i32_0 : i32, i32, i32
  }
  func.func @transform_1(%arg0: i32) -> (i32, i32) {
    %c0_i32 = arith.constant 0 : i32
    %c0_i32_0 = arith.constant 0 : i32
    %c0_i32_1 = arith.constant 0 : i32
    return %c0_i32, %c0_i32_0 : i32, i32
  }
  func.func @transform_2(%arg0: i32) -> (i32, i32) {
    %c0_i32 = arith.constant 0 : i32
    %c0_i32_0 = arith.constant 0 : i32
    %c0_i32_1 = arith.constant 0 : i32
    return %c0_i32, %c0_i32_0 : i32, i32
  }
  func.func @transform_3(%arg0: i32) -> (i32, i32) {
    %c0_i32 = arith.constant 0 : i32
    %c0_i32_0 = arith.constant 0 : i32
    %c0_i32_1 = arith.constant 0 : i32
    return %c0_i32, %c0_i32_0 : i32, i32
  }
  func.func @transform_4(%arg0: i32) -> (i32, i32) {
    %c0_i32 = arith.constant 0 : i32
    %c0_i32_0 = arith.constant 0 : i32
    return %arg0, %c0_i32 : i32, i32
  }
}

</mosaic_0001>

<bundles_post_ra>
// kernel: tpu_custom_call.1
= control target key start
LH: loop header
LB: loop body
LE: loop exit
PB: predicated region body
PF: predicated region fallthrough
CT: control target
= control target key end

     0   :  { %9 = vsyncpa [#allocation3], 0  ;;  %s445_s0 = inlined_call_operand.hbm [shape: f32[2,8,32], index: 0, kind: input, shape index: {}]   ;;  %s446_s1 = inlined_call_operand.hbm [shape: f32[32,32], index: 1, kind: input, shape index: {}]   ;;  %s447_s2 = inlined_call_operand.vmem [shape: f32[1,32], index: 2, kind: input, shape index: {}]   ;;  %s448_s3 = inlined_call_operand.vmem [shape: f32[1,32], index: 3, kind: input, shape index: {}]   ;;  %s449_s4 = inlined_call_operand.hbm [shape: f32[2,32], index: 4, kind: output, shape index: {}]  }
   0x1   :  { %10 = vsyncpa [#allocation6], 0 }
   0x2   :  { %11 = vsyncpa [#allocation4], 0  ;;  %s365_s15 = smov [#allocation2]   ;;  %s293_s19 = scalar_lea.hbm %s445_s0, 256 }
   0x3   :  { %s17_s16 = sshll.u32 %s365_s15, 4  ;;  %p294_p0 = scmp.ne.s32.totalorder %s445_s0, %s293_s19  ;;  %s18_s16 = int_to_ptr.vmem [resolvable:$true] %s17_s16 }
   0x4   :  { %p297_p1 = scmp.lt.u32.totalorder %s293_s19, %s445_s0 }
   0x6   :  { %p299_p2 = pnand %p297_p1, %p294_p0 }
   0x8   :  { %302 = shalt.err (!%p299_p2)
}
   0x9   :  { %s303_s24 = scalar_lea.vmem %s18_s16, 256  ;;  %p308_p4 = scmp.lt.s32.totalorder %s18_s16, %s18_s16 }
   0xa   :  { %p304_p3 = scmp.ne.s32.totalorder %s18_s16, %s303_s24  ;;  %p309_p5 = scmp.lt.s32.totalorder %s303_s24, %s303_s24 }
   0xc   :  { %p310_p6 = por %p309_p5, %p308_p4 }
   0xe   :  { %p311_p7 = pnand %p310_p6, %p304_p3 }
  0x10   :  { %314 = shalt.err (!%p311_p7)
}
  0x11   :  { %s366_s25 = smov 128   ;;  %s367_s26 = smov 8  }
  0x12   :  { %23 = dma.hbm_to_vmem [thread:$0]  %s445_s0, 256, %s18_s16, [#allocation3], %s366_s25, %s366_s25, %s367_s26  }
  0x13   :  { %s368_s29 = smov [#allocation5]   ;;  %s315_s7 = scalar_lea.hbm %s446_s1, 512 }
  0x14   :  { %s29_s30 = sshll.u32 %s368_s29, 4  ;;  %p316_p8 = scmp.ne.s32.totalorder %s446_s1, %s315_s7  ;;  %s30_s30 = int_to_ptr.vmem [resolvable:$true] %s29_s30 }
  0x15   :  { %p319_p9 = scmp.lt.u32.totalorder %s315_s7, %s446_s1 }
  0x17   :  { %p321_p10 = pnand %p319_p9, %p316_p8 }
  0x19   :  { %324 = shalt.err (!%p321_p10)
}
  0x1a   :  { %s325_s12 = scalar_lea.vmem %s30_s30, 512  ;;  %p330_p12 = scmp.lt.s32.totalorder %s30_s30, %s30_s30 }
  0x1b   :  { %p326_p11 = scmp.ne.s32.totalorder %s30_s30, %s325_s12  ;;  %p331_p13 = scmp.lt.s32.totalorder %s325_s12, %s325_s12 }
  0x1d   :  { %p332_p0 = por %p331_p13, %p330_p12 }
  0x1f   :  { %p333_p1 = pnand %p332_p0, %p326_p11 }
  0x21   :  { %336 = shalt.err (!%p333_p1)
}
  0x22   :  { %35 = dma.hbm_to_vmem [thread:$0]  %s446_s1, 512, %s30_s30, [#allocation6], %s366_s25, %s366_s25, %s367_s26  }
  0x23   :  { %359 = dma.done.wait [#allocation3], 256  }
  0x24   :  { %360 = vsyncadd [#allocation3], 4294967040 }
  0x25   :  { %361 = dma.done.wait [#allocation6], 512  }
  0x26   :  { %362 = vsyncadd [#allocation6], 4294966784  ;;  %vm59_vm0 = vcmask 261120   ;;  %v48_v0 = vld [vmem:[#allocation5] sm:$0xff]  ;;  %v49_v1 = vld [vmem:[#allocation5 + $0x8] sm:$0xff]  ;;  %vm222_vm2 = vcmask 1041409  }
  0x27   :  { %vm269_vm1 = vmpackc.low %vm59_vm0, %vm59_vm0  ;;  %v50_v2 = vld [vmem:[#allocation5 + $0x10] sm:$0xff]  ;;  %v268_v3 = vpack.c.bf16 %v49_v1, %v48_v0  ;;  %v51_v4 = vld [vmem:[#allocation5 + $0x18] sm:$0xff]  ;;  %vm225_vm3 = vcmask 254976  }
  0x28   :  { %v46_v5 = vld [vmem:[#allocation2] sm:$0xff]  ;;  %v274_v6 = vpack.c.bf16 %v51_v4, %v50_v2  ;;  %v47_v7 = vld [vmem:[#allocation2 + $0x8] sm:$0xff] }
  0x29   :  { %265 = vmatprep.mubr.msk.f32.mxu0 %vm59_vm0, %v46_v5  ;;  %270 = vmatprep.subr.msk.bf16.mxu0 %vm269_vm1, %v268_v3  ;;  %v243_v8 = vld [vmem:[%s447_s2] ss:$0 sm:$0xff]  ;;  %s369_s2 = smov [#allocation7]  }
  0x2a   :  { %273 = vmatpush3.bf16.xpose.msk.msra.mxu0 %vm269_vm1, %v268_v3  ;;  %v250_v13 = vld [vmem:[%s448_s3] ss:$0 sm:$0xff]  ;;  %s233_s3 = sshll.u32 %s369_s2, 4  ;;  %s234_s3 = int_to_ptr.vmem [resolvable:$true] %s233_s3 }
  0x2b   :  { %276 = vmatprep.subr.msk.bf16.mxu0 %vm269_vm1, %v274_v6  ;;  %s337_s17 = scalar_lea.vmem %s234_s3, 32  ;;  %p342_p3 = scmp.lt.s32.totalorder %s234_s3, %s234_s3 }
  0x2c   :  { %p338_p2 = scmp.ne.s32.totalorder %s234_s3, %s337_s17  ;;  %p343_p4 = scmp.lt.s32.totalorder %s337_s17, %s337_s17 }
  0x2e   :  { %p344_p5 = por %p343_p4, %p342_p3 }
  0x30   :  { %p345_p6 = pnand %p344_p5, %p338_p2 }
  0x32   :  { %279 = vmatpush3.bf16.xpose.msk.msra.mxu0 %vm269_vm1, %v274_v6 }
  0x39   :  { %266 = vmatmul.mubr.msk.f32.vlgmr.msra.gmra.mrb[0].mxu0 %vm59_vm0, %v47_v7 }
 0x10c   :  { %v267_v9 = vpop.f32.mrb[0].mxu0 }
 0x10d   :  { %v150_v10 = vadd.f32 %v267_v9, %v243_v8  ;;  %v144_v11 = vpop.f32.mrb[1].mxu0 }
 0x10e   :  { %v145_v12 = vadd.f32 %v243_v8, %v144_v11 }
 0x10f   :  { %v154_v14 = vmax.f32 %v150_v10, 0.0 }
 0x110   :  { %v153_v15 = vmax.f32 %v145_v12, 0.0 }
 0x111   :  { %v163_v18 = vmul.f32 %v250_v13, %v154_v14 }
 0x112   :  { %v162_v16 = vmul.f32 %v250_v13, %v153_v15 }
 0x113   :  { %v167_v19 = vsel %vm59_vm0, %v163_v18, 0.0 }
 0x114   :  { %v164_v17 = vsel %vm59_vm0, %v162_v16, 0.0 }
 0x115   :  { %165 = vadd.xlane.f32.xlu0 %v164_v17 }
 0x119   :  { %168 = vadd.xlane.f32.xlu0 %v167_v19 }
 0x1a2   :  { %v166_v20 = vpop.xlane.xlu0 %165 }
 0x1a3   :  { %v170_v21 = vrot.slane %v166_v20, 4 }
 0x1a5   :  { %v171_v22 = vmax.f32 %v166_v20, %v170_v21 }
 0x1a6   :  { %v169_v23 = vpop.xlane.xlu0 %168 }
 0x1a7   :  { %v172_v24 = vrot.slane %v171_v22, 2  ;;  %v176_v25 = vrot.slane %v169_v23, 4 }
 0x1a9   :  { %v173_v26 = vmax.f32 %v171_v22, %v172_v24  ;;  %v177_v27 = vmax.f32 %v169_v23, %v176_v25 }
 0x1ab   :  { %v174_v28 = vrot.slane %v173_v26, 1  ;;  %v178_v29 = vrot.slane %v177_v27, 2 }
 0x1ad   :  { %v175_v30 = vmax.f32 %v173_v26, %v174_v28  ;;  %v179_v31 = vmax.f32 %v177_v27, %v178_v29 }
 0x1af   :  { %v182_v32 = vsub.f32 %v166_v20, %v175_v30  ;;  %v180_v33 = vrot.slane %v179_v31, 1 }
 0x1b1   :  { %v184_v34 = vmul.f32 1.442695, %v182_v32  ;;  %v181_v35 = vmax.f32 %v179_v31, %v180_v33 }
 0x1b3   :  { %285 = vpow2.f32 %v184_v34  ;;  %v183_v36 = vsub.f32 %v169_v23, %v181_v35 }
 0x1b5   :  { %v186_v37 = vmul.f32 1.442695, %v183_v36 }
 0x1b7   :  { %287 = vpow2.f32 %v186_v37 }
 0x1bd   :  { %v286_v38 = vpop.eup %285 }
 0x1be   :  { %v188_v39 = vrot.slane %v286_v38, 4 }
 0x1c0   :  { %v189_v40 = vadd.f32 %v286_v38, %v188_v39 }
 0x1c1   :  { %v288_v41 = vpop.eup %287 }
 0x1c2   :  { %v190_v42 = vrot.slane %v189_v40, 2  ;;  %v194_v43 = vrot.slane %v288_v41, 4 }
 0x1c4   :  { %v195_v44 = vadd.f32 %v288_v41, %v194_v43  ;;  %v191_v45 = vadd.f32 %v190_v42, %v189_v40 }
 0x1c6   :  { %v196_v46 = vrot.slane %v195_v44, 2  ;;  %v192_v47 = vrot.slane %v191_v45, 1 }
 0x1c8   :  { %v197_v48 = vadd.f32 %v196_v46, %v195_v44  ;;  %v193_v49 = vadd.f32 %v192_v47, %v191_v45 }
 0x1ca   :  { %v198_v50 = vrot.slane %v197_v48, 1  ;;  %289 = vrcp.f32 %v193_v49 }
 0x1cc   :  { %v199_v51 = vadd.f32 %v198_v50, %v197_v48 }
 0x1ce   :  { %291 = vrcp.f32 %v199_v51 }
 0x1d4   :  { %v290_v52 = vpop.eup %289 }
 0x1d5   :  { %v202_v53 = vmul.f32 %v290_v52, %v286_v38 }
 0x1d7   :  { %v204_v54 = vmul.f32 %v202_v53, %v46_v5 }
 0x1d8   :  { %v292_v55 = vpop.eup %291 }
 0x1d9   :  { %v203_v56 = vmul.f32 %v292_v55, %v288_v41  ;;  %v206_v57 = vsel %vm59_vm0, %v204_v54, 0.0 }
 0x1da   :  { %v207_v58 = vrot.slane %v206_v57, 4 }
 0x1db   :  { %v205_v59 = vmul.f32 %v203_v56, %v47_v7 }
 0x1dc   :  { %v208_v60 = vadd.f32 %v207_v58, %v206_v57 }
 0x1dd   :  { %v213_v61 = vsel %vm59_vm0, %v205_v59, 0.0 }
 0x1de   :  { %v209_v62 = vrot.slane %v208_v60, 2  ;;  %v214_v63 = vrot.slane %v213_v61, 4 }
 0x1e0   :  { %v210_v0 = vadd.f32 %v209_v62, %v208_v60  ;;  %v215_v1 = vadd.f32 %v214_v63, %v213_v61 }
 0x1e2   :  { %v216_v2 = vrot.slane %v215_v1, 2  ;;  %v211_v3 = vrot.slane %v210_v0, 1 }
 0x1e4   :  { %v217_v4 = vadd.f32 %v216_v2, %v215_v1  ;;  %v212_v5 = vadd.f32 %v211_v3, %v210_v0 }
 0x1e6   :  { %v218_v6 = vrot.slane %v217_v4, 1 }
 0x1e8   :  { %v219_v8 = vadd.f32 %v218_v6, %v217_v4 }
 0x1ea   :  { %v223_v9 = vsel %vm222_vm2, %v219_v8, %v212_v5 }
 0x1eb   :  { %226 = vst.msk [vmem:[#allocation7] sm:$0x3] %vm225_vm3, %v223_v9 }
 0x1ec   :  { %348 = shalt.err (!%p345_p6)
}
 0x1ed   :  { %s349_s20 = scalar_lea.hbm %s449_s4, 32 }
 0x1ee   :  { %p350_p7 = scmp.ne.s32.totalorder %s449_s4, %s349_s20  ;;  %p353_p8 = scmp.lt.u32.totalorder %s349_s20, %s449_s4 }
 0x1f0   :  { %p355_p9 = pnand %p353_p8, %p350_p7 }
 0x1f2   :  { %358 = shalt.err (!%p355_p9)
}
 0x1f3   :  { %236 = dma.vmem_to_hbm [thread:$0]  %s234_s3, 32, %s449_s4, [#allocation4]  }
 0x1f4   :  { %363 = dma.done.wait [#allocation4], 32  }
 0x1f5   :  { %364 = vsyncadd [#allocation4], 4294967264 }
 0x1f6   :  { %240 = vsyncpa [#allocation3], 1 }
 0x1f7   :  { %241 = vsyncpa [#allocation6], 1 }
 0x1f8   :  { %242 = vsyncpa [#allocation4], 1 }

</bundles_post_ra>
